<compile_context>
chip_gen: v5e
topology: v5e:2x2
jax: 0.10.0
libtpu: 0.0.40
codegen_flags: <defaults>
</compile_context>

<pallas_src>
import functools

import jax
import jax.numpy as jnp
from jax.experimental import pallas as pl
from jax.experimental.pallas import tpu as pltpu

PAD_DIM = 128        # lane width every layer's weights are zero-padded to
NUM_LAYERS = 5
MAX_TILE_B = 1024    # sweep 512/1024/2048; 1024 amortizes per-step overhead well
MIN_TILE_B = 128     # keeps sublane/MXU dense


def _round_up(x: int, m: int) -> int:
    return ((x + m - 1) // m) * m


def _choose_tile_b(batch: int) -> int:
    """Large tiles to amortize per-grid-step overhead, but keep >=2 grid steps
    once the batch is big enough (both v7x TensorCores get work)."""
    b = _round_up(batch, MIN_TILE_B)
    if b <= 2 * MIN_TILE_B:
        return b                                    # tiny batch: single step
    return max(MIN_TILE_B, min(MAX_TILE_B, _round_up(b // 2, MIN_TILE_B)))


def _qnet_kernel(x_ref, w_ref, b_ref, o_ref, xpad_ref, *, in_dim, out_dim):
    # x_ref:    [tile_b, in_dim]   bf16  (real feature width, no HBM padding)
    # w_ref:    [5, 128, 128]      bf16  (VMEM-resident packed weights)
    # b_ref:    [5, 128]           f32   (VMEM-resident packed biases)
    # o_ref:    [tile_b, out_dim]  f32   (narrow, lane-masked store)
    # xpad_ref: [tile_b, 128]      bf16  scratch: x zero-padded to the MXU slab
    xpad_ref[...] = jnp.zeros_like(xpad_ref)
    xpad_ref[:, :in_dim] = x_ref[...]               # lane-masked store at offset 0
    h = xpad_ref[...]                               # [tile_b, 128] bf16
    for layer in range(NUM_LAYERS):
        acc = jnp.dot(h, w_ref[layer], preferred_element_type=jnp.float32)
        acc = acc + b_ref[layer:layer + 1, :]       # f32 bias add
        if layer < NUM_LAYERS - 1:
            h = jnp.maximum(acc, 0.0).astype(jnp.bfloat16)   # f32 ReLU -> bf16
        else:
            o_ref[...] = acc[:, :out_dim]           # narrow (masked) store


@functools.partial(jax.jit, static_argnames=("out_dim",))
def qnetwork_forward(x, w_packed, b_packed, *, out_dim):
    """x: [batch, in_dim] float; w_packed: [5,128,128] bf16; b_packed: [5,128] f32."""
    batch, in_dim = x.shape
    tile_b = _choose_tile_b(batch)
    b_pad = _round_up(batch, tile_b)

    xb = x.astype(jnp.bfloat16)
    if b_pad != batch:                 # cheap batch-only pad (in_dim-wide, bf16)
        xb = jnp.zeros((b_pad, in_dim), jnp.bfloat16).at[:batch, :].set(xb)

    out = pl.pallas_call(
        functools.partial(_qnet_kernel, in_dim=in_dim, out_dim=out_dim),
        out_shape=jax.ShapeDtypeStruct((b_pad, out_dim), jnp.float32),
        grid=(b_pad // tile_b,),
        in_specs=[
            pl.BlockSpec((tile_b, in_dim), lambda i: (i, 0)),                    # activations
            pl.BlockSpec((NUM_LAYERS, PAD_DIM, PAD_DIM), lambda i: (0, 0, 0)),   # weights: resident
            pl.BlockSpec((NUM_LAYERS, PAD_DIM), lambda i: (0, 0)),               # biases: resident
        ],
        out_specs=pl.BlockSpec((tile_b, out_dim), lambda i: (i, 0)),
        scratch_shapes=[pltpu.VMEM((tile_b, PAD_DIM), jnp.bfloat16)],
        compiler_params=pltpu.CompilerParams(dimension_semantics=("parallel",)),
    )(xb, w_packed, b_packed)

    return out if b_pad == batch else out[:batch]


# ----------------------------- parameter handling -----------------------------

def _xavier_uniform(key, in_f, out_f):
    # matches torch.nn.init.xavier_uniform_ (gain=1)
    a = (6.0 / (in_f + out_f)) ** 0.5
    return jax.random.uniform(key, (in_f, out_f), jnp.float32, minval=-a, maxval=a)


def _bias_init(key, in_f, out_f):
    # PyTorch Linear default bias init: U(-1/sqrt(fan_in), 1/sqrt(fan_in))
    bound = 1.0 / (in_f ** 0.5)
    return jax.random.uniform(key, (1, out_f), jnp.float32, minval=-bound, maxval=bound)


def make_params(key, layer_dims):
    params = []
    for (in_f, out_f) in layer_dims:
        key, kw, kb = jax.random.split(key, 3)
        params.append((_xavier_uniform(kw, in_f, out_f), _bias_init(kb, in_f, out_f)))
    return params


def pack_params(params):
    """One-time packing: zero-pad each (W, b) to (128,128)/(128,), stack, cast W to bf16.

    Zero padding is exact: padded input lanes hit zero weight rows, padded output
    lanes get zero weight columns + zero bias, so they stay zero through ReLU.
    """
    ws, bs = [], []
    for (w, b) in params:
        in_f, out_f = w.shape
        assert in_f <= PAD_DIM and out_f <= PAD_DIM, "layer dims must be <= 128"
        ws.append(jnp.zeros((PAD_DIM, PAD_DIM), jnp.float32).at[:in_f, :out_f].set(w))
        bs.append(jnp.zeros((PAD_DIM,), jnp.float32).at[:out_f].set(b.reshape(-1)))
    return jnp.stack(ws).astype(jnp.bfloat16), jnp.stack(bs)


# --------------------------------- references ---------------------------------

def reference_forward_f32(x, params):
    h = x
    for i, (w, b) in enumerate(params):
        h = h @ w + b
        if i < len(params) - 1:
            h = jnp.maximum(h, 0.0)
    return h


def reference_forward_bf16(x, params):
    # Mirrors the kernel arithmetic: bf16 matmul operands, f32 accumulate/bias/ReLU.
    h = x.astype(jnp.float32)
    for i, (w, b) in enumerate(params):
        h = jnp.dot(h.astype(jnp.bfloat16), w.astype(jnp.bfloat16),
                    preferred_element_type=jnp.float32) + b
        if i < len(params) - 1:
            h = jnp.maximum(h, 0.0)
    return h


if __name__ == "__main__":
    key = jax.random.PRNGKey(0)

    # state_size=8, hidden=32, action_size=4
    layer_dims = [(8, 32), (32, 32), (32, 32), (32, 32), (32, 4)]
    out_dim = layer_dims[-1][1]

    key, kx, kp = jax.random.split(key, 3)
    params = make_params(kp, layer_dims)
    w_packed, b_packed = pack_params(params)   # packed once, reused across calls

    # Small correctness check (batch=8, single grid step).
    batch = 8
    x = jax.random.normal(kx, (batch, layer_dims[0][0]), jnp.float32)
    out = jax.block_until_ready(qnetwork_forward(x, w_packed, b_packed, out_dim=out_dim))
    assert out.shape == (batch, out_dim)
    assert jnp.allclose(out, reference_forward_bf16(x, params), atol=2e-3, rtol=2e-3), \
        "mismatch vs bf16-matched reference"
    assert jnp.allclose(out, reference_forward_f32(x, params), atol=5e-2, rtol=5e-2), \
        "mismatch vs f32 reference"

    # Tile-aligned batch exercising the parallel grid (tile_b=256, 2 steps).
    key, kx2 = jax.random.split(key)
    x2 = jax.random.normal(kx2, (512, layer_dims[0][0]), jnp.float32)
    out2 = jax.block_until_ready(qnetwork_forward(x2, w_packed, b_packed, out_dim=out_dim))
    assert out2.shape == (512, out_dim)
    assert jnp.allclose(out2, reference_forward_bf16(x2, params), atol=2e-3, rtol=2e-3), \
        "mismatch vs bf16-matched reference (batched)"

    # Non-tile-aligned batch exercising the batch-only pad + output slice path.
    key, kx3 = jax.random.split(key)
    x3 = jax.random.normal(kx3, (300, layer_dims[0][0]), jnp.float32)
    out3 = jax.block_until_ready(qnetwork_forward(x3, w_packed, b_packed, out_dim=out_dim))
    assert out3.shape == (300, out_dim)
    assert jnp.allclose(out3, reference_forward_bf16(x3, params), atol=2e-3, rtol=2e-3), \
        "mismatch vs bf16-matched reference (ragged batch)"

    print("KERNEL_OK")
</pallas_src>

<mosaic_0001>
module attributes {stable_mosaic.version = 11 : i64} {
  func.func @_qnet_kernel(%arg0: i32, %arg1: memref<128x8xbf16, #tpu.memory_space<vmem>>, %arg2: memref<5x128x128xbf16, #tpu.memory_space<vmem>>, %arg3: memref<5x128xf32, #tpu.memory_space<vmem>>, %arg4: memref<128x4xf32, #tpu.memory_space<vmem>>, %arg5: memref<128x128xbf16, #tpu.memory_space<vmem>>) attributes {dimension_semantics = [#tpu.dimension_semantics<parallel>], iteration_bounds = array<i64: 1>, scalar_prefetch = 0 : i64, scratch_operands = 1 : i64, tpu.core_type = #tpu.core_type<tc>, window_params = [{transform_indices = @transform_0, window_bounds = array<i64: 128, 8>}, {pipeline_mode = #tpu.pipeline_mode<synchronous>, transform_indices = @transform_1, window_bounds = array<i64: 5, 128, 128>}, {pipeline_mode = #tpu.pipeline_mode<synchronous>, transform_indices = @transform_2, window_bounds = array<i64: 5, 128>}, {transform_indices = @transform_3, window_bounds = array<i64: 128, 4>}]} {
    %cst = arith.constant 0.000000e+00 : bf16
    %0 = vector.broadcast %cst : bf16 to vector<128x128xbf16>
    %c0 = arith.constant 0 : index
    %c0_0 = arith.constant 0 : index
    %1 = vector.load %arg5[%c0, %c0_0] : memref<128x128xbf16, #tpu.memory_space<vmem>>, vector<128x128xbf16>
    tpu.vector_store %arg5[%c0, %c0_0], %0 {strides = array<i32>} : memref<128x128xbf16, #tpu.memory_space<vmem>>, vector<128x128xbf16>,
    %c0_1 = arith.constant 0 : index
    %c0_2 = arith.constant 0 : index
    %2 = vector.load %arg1[%c0_1, %c0_2] : memref<128x8xbf16, #tpu.memory_space<vmem>>, vector<128x8xbf16>
    %c0_3 = arith.constant 0 : index
    %c0_4 = arith.constant 0 : index
    %3 = vector.load %arg5[%c0_3, %c0_4] : memref<128x128xbf16, #tpu.memory_space<vmem>>, vector<128x8xbf16>
    tpu.vector_store %arg5[%c0_3, %c0_4], %2 {strides = array<i32>} : memref<128x128xbf16, #tpu.memory_space<vmem>>, vector<128x8xbf16>,
    %c0_5 = arith.constant 0 : index
    %c0_6 = arith.constant 0 : index
    %4 = vector.load %arg5[%c0_5, %c0_6] : memref<128x128xbf16, #tpu.memory_space<vmem>>, vector<128x128xbf16>
    %c0_7 = arith.constant 0 : index
    %c0_8 = arith.constant 0 : index
    %c0_9 = arith.constant 0 : index
    %5 = vector.load %arg2[%c0_7, %c0_8, %c0_9] : memref<5x128x128xbf16, #tpu.memory_space<vmem>>, vector<1x128x128xbf16>
    %6 = vector.shape_cast %5 : vector<1x128x128xbf16> to vector<128x128xbf16>
    %cst_10 = arith.constant dense<0.000000e+00> : vector<128x128xf32>
    %7 = tpu.matmul %4, %6, %cst_10 {dimension_numbers = #tpu.dot_dimension_numbers<[1], [0], [0], [1], [0, 0, 1, 1], [], []>} : vector<128x128xbf16>, vector<128x128xbf16>, vector<128x128xf32> -> vector<128x128xf32>
    %c0_11 = arith.constant 0 : index
    %c0_12 = arith.constant 0 : index
    %8 = vector.load %arg3[%c0_11, %c0_12] : memref<5x128xf32, #tpu.memory_space<vmem>>, vector<1x128xf32>
    %9 = vector.broadcast %8 : vector<1x128xf32> to vector<128x128xf32>
    %10 = arith.addf %7, %9 : vector<128x128xf32>
    %cst_13 = arith.constant 0.000000e+00 : f32
    %11 = vector.broadcast %cst_13 : f32 to vector<128x128xf32>
    %12 = arith.maximumf %10, %11 : vector<128x128xf32>
    %13 = arith.truncf %12 : vector<128x128xf32> to vector<128x128xbf16>
    %c1 = arith.constant 1 : index
    %c0_14 = arith.constant 0 : index
    %c0_15 = arith.constant 0 : index
    %14 = vector.load %arg2[%c1, %c0_14, %c0_15] : memref<5x128x128xbf16, #tpu.memory_space<vmem>>, vector<1x128x128xbf16>
    %15 = vector.shape_cast %14 : vector<1x128x128xbf16> to vector<128x128xbf16>
    %cst_16 = arith.constant dense<0.000000e+00> : vector<128x128xf32>
    %16 = tpu.matmul %13, %15, %cst_16 {dimension_numbers = #tpu.dot_dimension_numbers<[1], [0], [0], [1], [0, 0, 1, 1], [], []>} : vector<128x128xbf16>, vector<128x128xbf16>, vector<128x128xf32> -> vector<128x128xf32>
    %c1_17 = arith.constant 1 : index
    %c0_18 = arith.constant 0 : index
    %17 = vector.load %arg3[%c1_17, %c0_18] : memref<5x128xf32, #tpu.memory_space<vmem>>, vector<1x128xf32>
    %18 = vector.broadcast %17 : vector<1x128xf32> to vector<128x128xf32>
    %19 = arith.addf %16, %18 : vector<128x128xf32>
    %cst_19 = arith.constant 0.000000e+00 : f32
    %20 = vector.broadcast %cst_19 : f32 to vector<128x128xf32>
    %21 = arith.maximumf %19, %20 : vector<128x128xf32>
    %22 = arith.truncf %21 : vector<128x128xf32> to vector<128x128xbf16>
    %c2 = arith.constant 2 : index
    %c0_20 = arith.constant 0 : index
    %c0_21 = arith.constant 0 : index
    %23 = vector.load %arg2[%c2, %c0_20, %c0_21] : memref<5x128x128xbf16, #tpu.memory_space<vmem>>, vector<1x128x128xbf16>
    %24 = vector.shape_cast %23 : vector<1x128x128xbf16> to vector<128x128xbf16>
    %cst_22 = arith.constant dense<0.000000e+00> : vector<128x128xf32>
    %25 = tpu.matmul %22, %24, %cst_22 {dimension_numbers = #tpu.dot_dimension_numbers<[1], [0], [0], [1], [0, 0, 1, 1], [], []>} : vector<128x128xbf16>, vector<128x128xbf16>, vector<128x128xf32> -> vector<128x128xf32>
    %c2_23 = arith.constant 2 : index
    %c0_24 = arith.constant 0 : index
    %26 = vector.load %arg3[%c2_23, %c0_24] : memref<5x128xf32, #tpu.memory_space<vmem>>, vector<1x128xf32>
    %27 = vector.broadcast %26 : vector<1x128xf32> to vector<128x128xf32>
    %28 = arith.addf %25, %27 : vector<128x128xf32>
    %cst_25 = arith.constant 0.000000e+00 : f32
    %29 = vector.broadcast %cst_25 : f32 to vector<128x128xf32>
    %30 = arith.maximumf %28, %29 : vector<128x128xf32>
    %31 = arith.truncf %30 : vector<128x128xf32> to vector<128x128xbf16>
    %c3 = arith.constant 3 : index
    %c0_26 = arith.constant 0 : index
    %c0_27 = arith.constant 0 : index
    %32 = vector.load %arg2[%c3, %c0_26, %c0_27] : memref<5x128x128xbf16, #tpu.memory_space<vmem>>, vector<1x128x128xbf16>
    %33 = vector.shape_cast %32 : vector<1x128x128xbf16> to vector<128x128xbf16>
    %cst_28 = arith.constant dense<0.000000e+00> : vector<128x128xf32>
    %34 = tpu.matmul %31, %33, %cst_28 {dimension_numbers = #tpu.dot_dimension_numbers<[1], [0], [0], [1], [0, 0, 1, 1], [], []>} : vector<128x128xbf16>, vector<128x128xbf16>, vector<128x128xf32> -> vector<128x128xf32>
    %c3_29 = arith.constant 3 : index
    %c0_30 = arith.constant 0 : index
    %35 = vector.load %arg3[%c3_29, %c0_30] : memref<5x128xf32, #tpu.memory_space<vmem>>, vector<1x128xf32>
    %36 = vector.broadcast %35 : vector<1x128xf32> to vector<128x128xf32>
    %37 = arith.addf %34, %36 : vector<128x128xf32>
    %cst_31 = arith.constant 0.000000e+00 : f32
    %38 = vector.broadcast %cst_31 : f32 to vector<128x128xf32>
    %39 = arith.maximumf %37, %38 : vector<128x128xf32>
    %40 = arith.truncf %39 : vector<128x128xf32> to vector<128x128xbf16>
    %c4 = arith.constant 4 : index
    %c0_32 = arith.constant 0 : index
    %c0_33 = arith.constant 0 : index
    %41 = vector.load %arg2[%c4, %c0_32, %c0_33] : memref<5x128x128xbf16, #tpu.memory_space<vmem>>, vector<1x128x128xbf16>
    %42 = vector.shape_cast %41 : vector<1x128x128xbf16> to vector<128x128xbf16>
    %cst_34 = arith.constant dense<0.000000e+00> : vector<128x128xf32>
    %43 = tpu.matmul %40, %42, %cst_34 {dimension_numbers = #tpu.dot_dimension_numbers<[1], [0], [0], [1], [0, 0, 1, 1], [], []>} : vector<128x128xbf16>, vector<128x128xbf16>, vector<128x128xf32> -> vector<128x128xf32>
    %c4_35 = arith.constant 4 : index
    %c0_36 = arith.constant 0 : index
    %44 = vector.load %arg3[%c4_35, %c0_36] : memref<5x128xf32, #tpu.memory_space<vmem>>, vector<1x128xf32>
    %45 = vector.broadcast %44 : vector<1x128xf32> to vector<128x128xf32>
    %46 = arith.addf %43, %45 : vector<128x128xf32>
    %47 = vector.extract_strided_slice %46 {offsets = [0, 0], sizes = [128, 4], strides = [1, 1]} : vector<128x128xf32> to vector<128x4xf32>
    %c0_37 = arith.constant 0 : index
    %c0_38 = arith.constant 0 : index
    %48 = vector.load %arg4[%c0_37, %c0_38] : memref<128x4xf32, #tpu.memory_space<vmem>>, vector<128x4xf32>
    tpu.vector_store %arg4[%c0_37, %c0_38], %47 {strides = array<i32>} : memref<128x4xf32, #tpu.memory_space<vmem>>, vector<128x4xf32>,
    return
  }
  func.func @transform_0(%arg0: i32) -> (i32, i32) {
    %c0_i32 = arith.constant 0 : i32
    %c0_i32_0 = arith.constant 0 : i32
    return %arg0, %c0_i32 : i32, i32
  }
  func.func @transform_1(%arg0: i32) -> (i32, i32, i32) {
    %c0_i32 = arith.constant 0 : i32
    %c0_i32_0 = arith.constant 0 : i32
    %c0_i32_1 = arith.constant 0 : i32
    %c0_i32_2 = arith.constant 0 : i32
    return %c0_i32, %c0_i32_0, %c0_i32_1 : i32, i32, i32
  }
  func.func @transform_2(%arg0: i32) -> (i32, i32) {
    %c0_i32 = arith.constant 0 : i32
    %c0_i32_0 = arith.constant 0 : i32
    %c0_i32_1 = arith.constant 0 : i32
    return %c0_i32, %c0_i32_0 : i32, i32
  }
  func.func @transform_3(%arg0: i32) -> (i32, i32) {
    %c0_i32 = arith.constant 0 : i32
    %c0_i32_0 = arith.constant 0 : i32
    return %arg0, %c0_i32 : i32, i32
  }
}

</mosaic_0001>

<bundles_post_ra>
// kernel: qnetwork_forward.1
= control target key start
LH: loop header
LB: loop body
LE: loop exit
PB: predicated region body
PF: predicated region fallthrough
CT: control target
= control target key end

     0   :  { %8 = vsyncpa [#allocation4], 0  ;;  %s1140_s15 = smov [#allocation3]   ;;  %s1141_s17 = smov 64   ;;  %s1364_s0 = inlined_call_operand.vmem [shape: bf16[128,8], index: 0, kind: input, shape index: {}]   ;;  %s1365_s1 = inlined_call_operand.hbm [shape: bf16[5,128,128], index: 1, kind: input, shape index: {}]   ;;  %s1366_s2 = inlined_call_operand.vmem [shape: f32[5,128], index: 2, kind: input, shape index: {}]   ;;  %s1367_s3 = inlined_call_operand.vmem [shape: f32[128,4], index: 3, kind: output, shape index: {}]  }
   0x1   :  { %s15_s14 = sshll.u32 %s1365_s1, 4  ;;  %s17_s16 = sshll.u32 %s1140_s15, 4  ;;  %s16_s14 = int_to_ptr.hbm [resolvable:$true] %s15_s14  ;;  %s18_s16 = int_to_ptr.vmem [resolvable:$true] %s17_s16 }
   0x2   :  { %s1142_s18 = smov 4  }
   0x3   :  { %23 = dma.hbm_to_vmem [thread:$0]  %s16_s14, 5120, %s18_s16, [#allocation4], %s1141_s17, %s1141_s17, %s1142_s18  }
   0x4   :  { %1138 = dma.done.wait [#allocation4], 5120  }
   0x5   :  { %1139 = vsyncadd [#allocation4], 4294962176  ;;  %v1143_v0 = vmov 0   ;;  %v1048_v1 = vld [vmem:[#allocation3 + $0x38] sm:$0xff]  ;;  %vm63_vm0 = vcmask 60416   ;;  %v1047_v2 = vld [vmem:[#allocation3 + $0x30] sm:$0xff] }
   0x6   :  { %31 = vst [vmem:[#allocation2] sm:$0xf] %v1143_v0  ;;  %210 = vmatpush.bf16.msra.mxu0 %v1048_v1  ;;  %1081 = vmatpush.bf16.msra.mxu1 %v1048_v1  ;;  %v47_v3 = vld [vmem:[%s1364_s0] sm:$0xf]  ;;  %v48_v4 = vld [vmem:[%s1364_s0 + $0x4] sm:$0xf] }
   0x7   :  { %32 = vst [vmem:[#allocation2 + $0x4] sm:$0xf] %v1143_v0  ;;  %1082 = vmatpush.bf16.msra.mxu2 %v1048_v1  ;;  %1083 = vmatpush.bf16.msra.mxu3 %v1048_v1  ;;  %v1046_v5 = vld [vmem:[#allocation3 + $0x28] sm:$0xff]  ;;  %v1045_v7 = vld [vmem:[#allocation3 + $0x20] sm:$0xff]  ;;  %v1044_v9 = vld [vmem:[#allocation3 + $0x18] sm:$0xff]  ;;  %vm819_vm1 = vcmask 31744  }
   0x8   :  { %33 = vst [vmem:[#allocation2 + $0x8] sm:$0xf] %v1143_v0  ;;  %v49_v6 = vld [vmem:[%s1364_s0 + $0x8] sm:$0xf]  ;;  %v50_v8 = vld [vmem:[%s1364_s0 + $0xc] sm:$0xf] }
   0x9   :  { %34 = vst [vmem:[#allocation2 + $0xc] sm:$0xf] %v1143_v0  ;;  %v51_v10 = vld [vmem:[%s1364_s0 + $0x10] sm:$0xf]  ;;  %v52_v11 = vld [vmem:[%s1364_s0 + $0x14] sm:$0xf] }
   0xa   :  { %35 = vst [vmem:[#allocation2 + $0x10] sm:$0xf] %v1143_v0  ;;  %211 = vmatpush.bf16.msra.mxu0 %v1047_v2  ;;  %1084 = vmatpush.bf16.msra.mxu1 %v1047_v2  ;;  %v1043_v12 = vld [vmem:[#allocation3 + $0x10] sm:$0xff]  ;;  %v53_v13 = vld [vmem:[%s1364_s0 + $0x18] sm:$0xf]  ;;  %v1042_v20 = vld [vmem:[#allocation3 + $0x8] sm:$0xff] }
   0xb   :  { %36 = vst [vmem:[#allocation2 + $0x14] sm:$0xf] %v1143_v0  ;;  %1085 = vmatpush.bf16.msra.mxu2 %v1047_v2  ;;  %1086 = vmatpush.bf16.msra.mxu3 %v1047_v2  ;;  %v54_v14 = vld [vmem:[%s1364_s0 + $0x1c] sm:$0xf]  ;;  %v55_v15 = vld [vmem:[%s1364_s0 + $0x20] sm:$0xf] }
   0xc   :  { %37 = vst [vmem:[#allocation2 + $0x18] sm:$0xf] %v1143_v0  ;;  %v56_v16 = vld [vmem:[%s1364_s0 + $0x24] sm:$0xf]  ;;  %v57_v17 = vld [vmem:[%s1364_s0 + $0x28] sm:$0xf] }
   0xd   :  { %38 = vst [vmem:[#allocation2 + $0x1c] sm:$0xf] %v1143_v0  ;;  %v58_v18 = vld [vmem:[%s1364_s0 + $0x2c] sm:$0xf]  ;;  %v59_v19 = vld [vmem:[%s1364_s0 + $0x30] sm:$0xf] }
   0xe   :  { %39 = vst [vmem:[#allocation2 + $0x20] sm:$0xf] %v1143_v0  ;;  %212 = vmatpush.bf16.msra.mxu0 %v1046_v5  ;;  %1087 = vmatpush.bf16.msra.mxu1 %v1046_v5  ;;  %v60_v21 = vld [vmem:[%s1364_s0 + $0x34] sm:$0xf]  ;;  %v61_v22 = vld [vmem:[%s1364_s0 + $0x38] sm:$0xf] }
   0xf   :  { %64 = vst.msk [vmem:[#allocation2] sm:$0xf] %vm63_vm0, %v47_v3  ;;  %1088 = vmatpush.bf16.msra.mxu2 %v1046_v5  ;;  %1089 = vmatpush.bf16.msra.mxu3 %v1046_v5  ;;  %v62_v23 = vld [vmem:[%s1364_s0 + $0x3c] sm:$0xf]  ;;  %v1041_v24 = vld [vmem:[#allocation3] sm:$0xff]  ;;  %v1055_v30 = vld [vmem:[#allocation3 + $0x70] sm:$0xff] }
  0x10   :  { %65 = vst.msk [vmem:[#allocation2 + $0x4] sm:$0xf] %vm63_vm0, %v48_v4  ;;  %v1056_v25 = vld [vmem:[#allocation3 + $0x78] sm:$0xff]  ;;  %v1054_v31 = vld [vmem:[#allocation3 + $0x68] sm:$0xff]  ;;  %v1053_v32 = vld [vmem:[#allocation3 + $0x60] sm:$0xff] }
  0x11   :  { %40 = vst [vmem:[#allocation2 + $0x24] sm:$0xf] %v1143_v0  ;;  %v1052_v33 = vld [vmem:[#allocation3 + $0x58] sm:$0xff]  ;;  %v1051_v38 = vld [vmem:[#allocation3 + $0x50] sm:$0xff]  ;;  %v1050_v39 = vld [vmem:[#allocation3 + $0x48] sm:$0xff] }
  0x12   :  { %41 = vst [vmem:[#allocation2 + $0x28] sm:$0xf] %v1143_v0  ;;  %213 = vmatpush.bf16.msra.mxu0 %v1045_v7  ;;  %1090 = vmatpush.bf16.msra.mxu1 %v1045_v7  ;;  %v1049_v40 = vld [vmem:[#allocation3 + $0x40] sm:$0xff] }
  0x13   :  { %42 = vst [vmem:[#allocation2 + $0x2c] sm:$0xf] %v1143_v0  ;;  %1091 = vmatpush.bf16.msra.mxu2 %v1045_v7  ;;  %1092 = vmatpush.bf16.msra.mxu3 %v1045_v7  ;;  %v1234_v42 = vld [vmem:[%s1366_s2] ss:$0 sm:$0xff] }
  0x14   :  { %43 = vst [vmem:[#allocation2 + $0x30] sm:$0xf] %v1143_v0 }
  0x15   :  { %44 = vst [vmem:[#allocation2 + $0x34] sm:$0xf] %v1143_v0 }
  0x16   :  { %45 = vst [vmem:[#allocation2 + $0x38] sm:$0xf] %v1143_v0  ;;  %214 = vmatpush.bf16.msra.mxu0 %v1044_v9  ;;  %1093 = vmatpush.bf16.msra.mxu1 %v1044_v9 }
  0x17   :  { %46 = vst [vmem:[#allocation2 + $0x3c] sm:$0xf] %v1143_v0  ;;  %1094 = vmatpush.bf16.msra.mxu2 %v1044_v9  ;;  %1095 = vmatpush.bf16.msra.mxu3 %v1044_v9  ;;  %v1033_v26 = vld [vmem:[#allocation2] sm:$0xff] }
  0x18   :  { %66 = vst.msk [vmem:[#allocation2 + $0x8] sm:$0xf] %vm63_vm0, %v49_v6 }
  0x19   :  { %67 = vst.msk [vmem:[#allocation2 + $0xc] sm:$0xf] %vm63_vm0, %v50_v8 }
  0x1a   :  { %68 = vst.msk [vmem:[#allocation2 + $0x10] sm:$0xf] %vm63_vm0, %v51_v10  ;;  %215 = vmatpush.bf16.msra.mxu0 %v1043_v12  ;;  %1096 = vmatpush.bf16.msra.mxu1 %v1043_v12 }
  0x1b   :  { %69 = vst.msk [vmem:[#allocation2 + $0x14] sm:$0xf] %vm63_vm0, %v52_v11  ;;  %1097 = vmatpush.bf16.msra.mxu2 %v1043_v12  ;;  %1098 = vmatpush.bf16.msra.mxu3 %v1043_v12 }
  0x1c   :  { %70 = vst.msk [vmem:[#allocation2 + $0x18] sm:$0xf] %vm63_vm0, %v53_v13 }
  0x1d   :  { %71 = vst.msk [vmem:[#allocation2 + $0x1c] sm:$0xf] %vm63_vm0, %v54_v14  ;;  %v1064_v14 = vld [vmem:[#allocation3 + $0xb8] sm:$0xff] }
  0x1e   :  { %72 = vst.msk [vmem:[#allocation2 + $0x20] sm:$0xf] %vm63_vm0, %v55_v15  ;;  %216 = vmatpush.bf16.msra.mxu0 %v1042_v20  ;;  %1099 = vmatpush.bf16.msra.mxu1 %v1042_v20 }
  0x1f   :  { %73 = vst.msk [vmem:[#allocation2 + $0x24] sm:$0xf] %vm63_vm0, %v56_v16  ;;  %1100 = vmatpush.bf16.msra.mxu2 %v1042_v20  ;;  %1101 = vmatpush.bf16.msra.mxu3 %v1042_v20 }
  0x20   :  { %74 = vst.msk [vmem:[#allocation2 + $0x28] sm:$0xf] %vm63_vm0, %v57_v17  ;;  %v1034_v34 = vld [vmem:[#allocation2 + $0x8] sm:$0xff] }
  0x21   :  { %75 = vst.msk [vmem:[#allocation2 + $0x2c] sm:$0xf] %vm63_vm0, %v58_v18 }
  0x22   :  { %76 = vst.msk [vmem:[#allocation2 + $0x30] sm:$0xf] %vm63_vm0, %v59_v19  ;;  %v1035_v27 = vld [vmem:[#allocation2 + $0x10] sm:$0xff]  ;;  %217 = vmatpush.bf16.msra.mxu0 %v1041_v24  ;;  %1102 = vmatpush.bf16.msra.mxu1 %v1041_v24 }
  0x23   :  { %77 = vst.msk [vmem:[#allocation2 + $0x34] sm:$0xf] %vm63_vm0, %v60_v21  ;;  %1103 = vmatpush.bf16.msra.mxu2 %v1041_v24  ;;  %1104 = vmatpush.bf16.msra.mxu3 %v1041_v24  ;;  %v1062_v24 = vld [vmem:[#allocation3 + $0xa8] sm:$0xff] }
  0x24   :  { %78 = vst.msk [vmem:[#allocation2 + $0x38] sm:$0xf] %vm63_vm0, %v61_v22  ;;  %v1036_v35 = vld [vmem:[#allocation2 + $0x18] sm:$0xff] }
  0x25   :  { %79 = vst.msk [vmem:[#allocation2 + $0x3c] sm:$0xf] %vm63_vm0, %v62_v23  ;;  %218 = vmatmul.bf16.vlgmr.msra.gmra.mxu0 %v1033_v26  ;;  %228 = vmatmul.bf16.vlgmr.msra.gmra.mxu1 %v1035_v27  ;;  %v1063_v23 = vld [vmem:[#allocation3 + $0xb0] sm:$0xff] }
  0x26   :  { %v1037_v28 = vld [vmem:[#allocation2 + $0x20] sm:$0xff]  ;;  %350 = vmatpush.bf16.msrb.mxu1 %v1056_v25 }
  0x27   :  { %238 = vmatmul.bf16.vlgmr.msra.gmra.mxu2 %v1037_v28  ;;  %v1061_v25 = vld [vmem:[#allocation3 + $0xa0] sm:$0xff] }
  0x28   :  { %v1038_v36 = vld [vmem:[#allocation2 + $0x28] sm:$0xff]  ;;  %490 = vmatpush.bf16.msrb.mxu2 %v1064_v14 }
  0x2a   :  { %v1039_v29 = vld [vmem:[#allocation2 + $0x30] sm:$0xff]  ;;  %351 = vmatpush.bf16.msrb.mxu1 %v1055_v30 }
  0x2b   :  { %248 = vmatmul.bf16.vlgmr.msra.gmra.mxu3 %v1039_v29  ;;  %v1060_v29 = vld [vmem:[#allocation3 + $0x98] sm:$0xff] }
  0x2c   :  { %v1040_v37 = vld [vmem:[#allocation2 + $0x38] sm:$0xff]  ;;  %491 = vmatpush.bf16.msrb.mxu2 %v1063_v23  ;;  %v1071_v23 = vld [vmem:[#allocation3 + $0xf0] sm:$0xff] }
  0x2e   :  { %352 = vmatpush.bf16.msrb.mxu1 %v1054_v31 }
  0x30   :  { %492 = vmatpush.bf16.msrb.mxu2 %v1062_v24  ;;  %v1070_v24 = vld [vmem:[#allocation3 + $0xe8] sm:$0xff] }
  0x32   :  { %353 = vmatpush.bf16.msrb.mxu1 %v1053_v32 }
  0x34   :  { %493 = vmatpush.bf16.msrb.mxu2 %v1061_v25 }
  0x35   :  { %223 = vmatmul.bf16.gmra.mxu0 %v1034_v34  ;;  %233 = vmatmul.bf16.gmra.mxu1 %v1036_v35  ;;  %v1058_v34 = vld [vmem:[#allocation3 + $0x88] sm:$0xff] }
  0x36   :  { %354 = vmatpush.bf16.msrb.mxu1 %v1052_v33  ;;  %v1059_v33 = vld [vmem:[#allocation3 + $0x90] sm:$0xff] }
  0x37   :  { %243 = vmatmul.bf16.gmra.mxu2 %v1038_v36 }
  0x38   :  { %494 = vmatpush.bf16.msrb.mxu2 %v1060_v29 }
  0x3a   :  { %355 = vmatpush.bf16.msrb.mxu1 %v1051_v38  ;;  %v1057_v38 = vld [vmem:[#allocation3 + $0x80] sm:$0xff] }
  0x3b   :  { %253 = vmatmul.bf16.gmra.mxu3 %v1040_v37 }
  0x3c   :  { %495 = vmatpush.bf16.msrb.mxu2 %v1059_v33 }
  0x3e   :  { %356 = vmatpush.bf16.msrb.mxu1 %v1050_v39 }
  0x40   :  { %496 = vmatpush.bf16.msrb.mxu2 %v1058_v34  ;;  %v1067_v34 = vld [vmem:[#allocation3 + $0xd0] sm:$0xff] }
  0x42   :  { %357 = vmatpush.bf16.msrb.mxu1 %v1049_v40 }
  0x44   :  { %497 = vmatpush.bf16.msrb.mxu2 %v1057_v38 }
  0xa2   :  { %v219_v41 = vpop.f32.mrf.mxu0  ;;  %v229_v50 = vpop.f32.mrf.mxu1 }
  0xa3   :  { %v220_v43 = vadd.f32 %v1234_v42, %v219_v41  ;;  %v230_v58 = vadd.f32 %v1234_v42, %v229_v50 }
  0xa5   :  { %v259_v46 = vmax.f32 %v220_v43, 0.0  ;;  %v263_v61 = vmax.f32 %v230_v58, 0.0 }
  0xaa   :  { %v221_v44 = vpop.f32.mrf.mxu0  ;;  %v231_v57 = vpop.f32.mrf.mxu1 }
  0xab   :  { %v222_v45 = vadd.f32 %v1234_v42, %v221_v44  ;;  %v232_v59 = vadd.f32 %v1234_v42, %v231_v57  ;;  %v239_v1 = vpop.f32.mrf.mxu2  ;;  %v1255_v44 = vld [vmem:[%s1366_s2 + $0x1] ss:$0 sm:$0xff] }
  0xac   :  { %v240_v8 = vadd.f32 %v1234_v42, %v239_v1 }
  0xad   :  { %v260_v47 = vmax.f32 %v222_v45, 0.0  ;;  %v264_v62 = vmax.f32 %v232_v59, 0.0 }
  0xae   :  { %v267_v11 = vmax.f32 %v240_v8, 0.0  ;;  %v249_v16 = vpop.f32.mrf.mxu3 }
  0xaf   :  { %v275_v48 = vpack.c.bf16 %v260_v47, %v259_v46  ;;  %v277_v63 = vpack.c.bf16 %v264_v62, %v263_v61  ;;  %v250_v26 = vadd.f32 %v1234_v42, %v249_v16 }
  0xb1   :  { %358 = vmatmul.bf16.vlgmr.msrb.gmra.mxu1 %v275_v48  ;;  %v271_v30 = vmax.f32 %v250_v26, 0.0 }
  0xb2   :  { %v224_v49 = vpop.f32.mrf.mxu0  ;;  %v234_v60 = vpop.f32.mrf.mxu1 }
  0xb3   :  { %v225_v51 = vadd.f32 %v1234_v42, %v224_v49  ;;  %v235_v2 = vadd.f32 %v1234_v42, %v234_v60  ;;  %v241_v7 = vpop.f32.mrf.mxu2 }
  0xb4   :  { %v242_v9 = vadd.f32 %v1234_v42, %v241_v7 }
  0xb5   :  { %v261_v54 = vmax.f32 %v225_v51, 0.0  ;;  %v265_v4 = vmax.f32 %v235_v2, 0.0 }
  0xb6   :  { %v268_v12 = vmax.f32 %v242_v9, 0.0  ;;  %v251_v22 = vpop.f32.mrf.mxu3 }
  0xb7   :  { %v252_v27 = vadd.f32 %v1234_v42, %v251_v22 }
  0xb8   :  { %v279_v13 = vpack.c.bf16 %v268_v12, %v267_v11 }
  0xb9   :  { %v272_v31 = vmax.f32 %v252_v27, 0.0 }
  0xba   :  { %v226_v52 = vpop.f32.mrf.mxu0  ;;  %v236_v0 = vpop.f32.mrf.mxu1 }
  0xbb   :  { %v227_v53 = vadd.f32 %v1234_v42, %v226_v52  ;;  %v237_v3 = vadd.f32 %v1234_v42, %v236_v0  ;;  %v244_v10 = vpop.f32.mrf.mxu2  ;;  %v281_v32 = vpack.c.bf16 %v272_v31, %v271_v30 }
  0xbc   :  { %v245_v17 = vadd.f32 %v1234_v42, %v244_v10 }
  0xbd   :  { %v262_v55 = vmax.f32 %v227_v53, 0.0  ;;  %v266_v5 = vmax.f32 %v237_v3, 0.0 }
  0xbe   :  { %v269_v19 = vmax.f32 %v245_v17, 0.0  ;;  %v254_v28 = vpop.f32.mrf.mxu3 }
  0xbf   :  { %v276_v56 = vpack.c.bf16 %v262_v55, %v261_v54  ;;  %v278_v6 = vpack.c.bf16 %v266_v5, %v265_v4  ;;  %v255_v36 = vadd.f32 %v1234_v42, %v254_v28  ;;  %v1069_v28 = vld [vmem:[#allocation3 + $0xe0] sm:$0xff] }
  0xc1   :  { %363 = vmatmul.bf16.gmra.mxu1 %v276_v56  ;;  %v273_v39 = vmax.f32 %v255_v36, 0.0 }
  0xc3   :  { %v246_v15 = vpop.f32.mrf.mxu2 }
  0xc4   :  { %v247_v18 = vadd.f32 %v1234_v42, %v246_v15 }
  0xc6   :  { %v270_v20 = vmax.f32 %v247_v18, 0.0  ;;  %v256_v35 = vpop.f32.mrf.mxu3 }
  0xc7   :  { %v257_v37 = vadd.f32 %v1234_v42, %v256_v35  ;;  %v1066_v35 = vld [vmem:[#allocation3 + $0xc8] sm:$0xff] }
  0xc8   :  { %v280_v21 = vpack.c.bf16 %v270_v20, %v269_v19 }
  0xc9   :  { %v274_v40 = vmax.f32 %v257_v37, 0.0 }
  0xcb   :  { %v282_v41 = vpack.c.bf16 %v274_v40, %v273_v39 }
  0xd1   :  { %368 = vmatmul.bf16.gmra.mxu1 %v277_v63 }
  0xe1   :  { %373 = vmatmul.bf16.gmra.mxu1 %v278_v6 }
  0xf1   :  { %378 = vmatmul.bf16.gmra.mxu1 %v279_v13 }
 0x101   :  { %383 = vmatmul.bf16.gmra.mxu1 %v280_v21  ;;  %v1072_v21 = vld [vmem:[#allocation3 + $0xf8] sm:$0xff] }
 0x102   :  { %630 = vmatpush.bf16.msrb.mxu3 %v1072_v21 }
 0x106   :  { %631 = vmatpush.bf16.msrb.mxu3 %v1071_v23 }
 0x10a   :  { %632 = vmatpush.bf16.msrb.mxu3 %v1070_v24  ;;  %v1079_v24 = vld [vmem:[#allocation3 + $0x130] sm:$0xff] }
 0x10e   :  { %633 = vmatpush.bf16.msrb.mxu3 %v1069_v28 }
 0x111   :  { %388 = vmatmul.bf16.gmra.mxu1 %v281_v32  ;;  %v1068_v32 = vld [vmem:[#allocation3 + $0xd8] sm:$0xff] }
 0x112   :  { %634 = vmatpush.bf16.msrb.mxu3 %v1068_v32 }
 0x116   :  { %635 = vmatpush.bf16.msrb.mxu3 %v1067_v34 }
 0x11a   :  { %636 = vmatpush.bf16.msrb.mxu3 %v1066_v35  ;;  %v1075_v35 = vld [vmem:[#allocation3 + $0x110] sm:$0xff] }
 0x121   :  { %393 = vmatmul.bf16.gmra.mxu1 %v282_v41  ;;  %v1065_v41 = vld [vmem:[#allocation3 + $0xc0] sm:$0xff] }
 0x122   :  { %637 = vmatpush.bf16.msrb.mxu3 %v1065_v41 }
 0x12e   :  { %v359_v43 = vpop.f32.mrf.mxu1 }
 0x12f   :  { %v360_v45 = vadd.f32 %v1255_v44, %v359_v43 }
 0x131   :  { %v399_v48 = vmax.f32 %v360_v45, 0.0 }
 0x136   :  { %v361_v46 = vpop.f32.mrf.mxu1 }
 0x137   :  { %v362_v47 = vadd.f32 %v1255_v44, %v361_v46  ;;  %v1276_v46 = vld [vmem:[%s1366_s2 + $0x2] ss:$0 sm:$0xff] }
 0x139   :  { %v400_v49 = vmax.f32 %v362_v47, 0.0 }
 0x13b   :  { %v415_v42 = vpack.c.bf16 %v400_v49, %v399_v48 }
 0x13d   :  { %498 = vmatmul.bf16.vlgmr.msrb.gmra.mxu2 %v415_v42 }
 0x13e   :  { %v364_v50 = vpop.f32.mrf.mxu1 }
 0x13f   :  { %v365_v51 = vadd.f32 %v1255_v44, %v364_v50 }
 0x141   :  { %v401_v54 = vmax.f32 %v365_v51, 0.0 }
 0x146   :  { %v366_v52 = vpop.f32.mrf.mxu1 }
 0x147   :  { %v367_v53 = vadd.f32 %v1255_v44, %v366_v52 }
 0x149   :  { %v402_v55 = vmax.f32 %v367_v53, 0.0 }
 0x14b   :  { %v416_v56 = vpack.c.bf16 %v402_v55, %v401_v54 }
 0x14d   :  { %503 = vmatmul.bf16.gmra.mxu2 %v416_v56 }
 0x14e   :  { %v369_v57 = vpop.f32.mrf.mxu1 }
 0x14f   :  { %v370_v58 = vadd.f32 %v1255_v44, %v369_v57 }
 0x151   :  { %v403_v61 = vmax.f32 %v370_v58, 0.0 }
 0x156   :  { %v371_v59 = vpop.f32.mrf.mxu1 }
 0x157   :  { %v372_v60 = vadd.f32 %v1255_v44, %v371_v59 }
 0x159   :  { %v404_v62 = vmax.f32 %v372_v60, 0.0 }
 0x15b   :  { %v417_v63 = vpack.c.bf16 %v404_v62, %v403_v61 }
 0x15d   :  { %508 = vmatmul.bf16.gmra.mxu2 %v417_v63 }
 0x15e   :  { %v374_v0 = vpop.f32.mrf.mxu1 }
 0x15f   :  { %v375_v1 = vadd.f32 %v1255_v44, %v374_v0 }
 0x161   :  { %v405_v4 = vmax.f32 %v375_v1, 0.0 }
 0x166   :  { %v376_v2 = vpop.f32.mrf.mxu1 }
 0x167   :  { %v377_v3 = vadd.f32 %v1255_v44, %v376_v2 }
 0x169   :  { %v406_v5 = vmax.f32 %v377_v3, 0.0 }
 0x16b   :  { %v418_v6 = vpack.c.bf16 %v406_v5, %v405_v4 }
 0x16d   :  { %513 = vmatmul.bf16.gmra.mxu2 %v418_v6 }
 0x16e   :  { %v379_v7 = vpop.f32.mrf.mxu1 }
 0x16f   :  { %v380_v8 = vadd.f32 %v1255_v44, %v379_v7 }
 0x171   :  { %v407_v11 = vmax.f32 %v380_v8, 0.0 }
 0x176   :  { %v381_v9 = vpop.f32.mrf.mxu1 }
 0x177   :  { %v382_v10 = vadd.f32 %v1255_v44, %v381_v9 }
 0x179   :  { %v408_v12 = vmax.f32 %v382_v10, 0.0 }
 0x17b   :  { %v419_v13 = vpack.c.bf16 %v408_v12, %v407_v11 }
 0x17d   :  { %518 = vmatmul.bf16.gmra.mxu2 %v419_v13 }
 0x17e   :  { %v384_v14 = vpop.f32.mrf.mxu1 }
 0x17f   :  { %v385_v15 = vadd.f32 %v1255_v44, %v384_v14 }
 0x181   :  { %v409_v18 = vmax.f32 %v385_v15, 0.0 }
 0x186   :  { %v386_v16 = vpop.f32.mrf.mxu1 }
 0x187   :  { %v387_v17 = vadd.f32 %v1255_v44, %v386_v16 }
 0x189   :  { %v410_v19 = vmax.f32 %v387_v17, 0.0 }
 0x18b   :  { %v420_v20 = vpack.c.bf16 %v410_v19, %v409_v18 }
 0x18d   :  { %523 = vmatmul.bf16.gmra.mxu2 %v420_v20 }
 0x18e   :  { %v389_v22 = vpop.f32.mrf.mxu1 }
 0x18f   :  { %v390_v25 = vadd.f32 %v1255_v44, %v389_v22  ;;  %v1080_v22 = vld [vmem:[#allocation3 + $0x138] sm:$0xff] }
 0x190   :  { %770 = vmatpush.bf16.msrb.mxu0 %v1080_v22 }
 0x191   :  { %v411_v29 = vmax.f32 %v390_v25, 0.0  ;;  %v1078_v25 = vld [vmem:[#allocation3 + $0x128] sm:$0xff] }
 0x194   :  { %771 = vmatpush.bf16.msrb.mxu0 %v1079_v24 }
 0x196   :  { %v391_v26 = vpop.f32.mrf.mxu1 }
 0x197   :  { %v392_v27 = vadd.f32 %v1255_v44, %v391_v26 }
 0x198   :  { %772 = vmatpush.bf16.msrb.mxu0 %v1078_v25 }
 0x199   :  { %v412_v30 = vmax.f32 %v392_v27, 0.0 }
 0x19b   :  { %v421_v31 = vpack.c.bf16 %v412_v30, %v411_v29  ;;  %v1077_v29 = vld [vmem:[#allocation3 + $0x120] sm:$0xff] }
 0x19c   :  { %773 = vmatpush.bf16.msrb.mxu0 %v1077_v29 }
 0x19d   :  { %528 = vmatmul.bf16.gmra.mxu2 %v421_v31 }
 0x19e   :  { %v394_v33 = vpop.f32.mrf.mxu1 }
 0x19f   :  { %v395_v36 = vadd.f32 %v1255_v44, %v394_v33  ;;  %v1076_v33 = vld [vmem:[#allocation3 + $0x118] sm:$0xff] }
 0x1a0   :  { %774 = vmatpush.bf16.msrb.mxu0 %v1076_v33 }
 0x1a1   :  { %v413_v39 = vmax.f32 %v395_v36, 0.0  ;;  %v1074_v36 = vld [vmem:[#allocation3 + $0x108] sm:$0xff] }
 0x1a4   :  { %775 = vmatpush.bf16.msrb.mxu0 %v1075_v35 }
 0x1a6   :  { %v396_v37 = vpop.f32.mrf.mxu1 }
 0x1a7   :  { %v397_v38 = vadd.f32 %v1255_v44, %v396_v37 }
 0x1a8   :  { %776 = vmatpush.bf16.msrb.mxu0 %v1074_v36 }
 0x1a9   :  { %v414_v40 = vmax.f32 %v397_v38, 0.0 }
 0x1ab   :  { %v422_v43 = vpack.c.bf16 %v414_v40, %v413_v39 }
 0x1ad   :  { %533 = vmatmul.bf16.gmra.mxu2 %v422_v43  ;;  %v1073_v43 = vld [vmem:[#allocation3 + $0x100] sm:$0xff] }
 0x1ae   :  { %777 = vmatpush.bf16.msrb.mxu0 %v1073_v43 }
 0x1c0   :  { %v499_v45 = vpop.f32.mrf.mxu2 }
 0x1c1   :  { %v500_v47 = vadd.f32 %v1276_v46, %v499_v45 }
 0x1c3   :  { %v539_v42 = vmax.f32 %v500_v47, 0.0 }
 0x1c8   :  { %v501_v48 = vpop.f32.mrf.mxu2 }
 0x1c9   :  { %v502_v49 = vadd.f32 %v1276_v46, %v501_v48  ;;  %v1112_v48 = vld [vmem:[%s1366_s2 + $0x3] ss:$0 sm:$0xff] }
 0x1cb   :  { %v540_v44 = vmax.f32 %v502_v49, 0.0 }
 0x1cd   :  { %v555_v50 = vpack.c.bf16 %v540_v44, %v539_v42 }
 0x1cf   :  { %638 = vmatmul.bf16.vlgmr.msrb.gmra.mxu3 %v555_v50 }
 0x1d0   :  { %v504_v51 = vpop.f32.mrf.mxu2 }
 0x1d1   :  { %v505_v52 = vadd.f32 %v1276_v46, %v504_v51 }
 0x1d3   :  { %v541_v55 = vmax.f32 %v505_v52, 0.0 }
 0x1d8   :  { %v506_v53 = vpop.f32.mrf.mxu2 }
 0x1d9   :  { %v507_v54 = vadd.f32 %v1276_v46, %v506_v53 }
 0x1db   :  { %v542_v56 = vmax.f32 %v507_v54, 0.0 }
 0x1dd   :  { %v556_v57 = vpack.c.bf16 %v542_v56, %v541_v55 }
 0x1df   :  { %643 = vmatmul.bf16.gmra.mxu3 %v556_v57 }
 0x1e0   :  { %v509_v58 = vpop.f32.mrf.mxu2 }
 0x1e1   :  { %v510_v59 = vadd.f32 %v1276_v46, %v509_v58 }
 0x1e3   :  { %v543_v62 = vmax.f32 %v510_v59, 0.0 }
 0x1e8   :  { %v511_v60 = vpop.f32.mrf.mxu2 }
 0x1e9   :  { %v512_v61 = vadd.f32 %v1276_v46, %v511_v60 }
 0x1eb   :  { %v544_v63 = vmax.f32 %v512_v61, 0.0 }
 0x1ed   :  { %v557_v0 = vpack.c.bf16 %v544_v63, %v543_v62 }
 0x1ef   :  { %648 = vmatmul.bf16.gmra.mxu3 %v557_v0 }
 0x1f0   :  { %v514_v1 = vpop.f32.mrf.mxu2 }
 0x1f1   :  { %v515_v2 = vadd.f32 %v1276_v46, %v514_v1 }
 0x1f3   :  { %v545_v5 = vmax.f32 %v515_v2, 0.0 }
 0x1f8   :  { %v516_v3 = vpop.f32.mrf.mxu2 }
 0x1f9   :  { %v517_v4 = vadd.f32 %v1276_v46, %v516_v3 }
 0x1fb   :  { %v546_v6 = vmax.f32 %v517_v4, 0.0 }
 0x1fd   :  { %v558_v7 = vpack.c.bf16 %v546_v6, %v545_v5 }
 0x1ff   :  { %653 = vmatmul.bf16.gmra.mxu3 %v558_v7 }
 0x200   :  { %v519_v8 = vpop.f32.mrf.mxu2 }
 0x201   :  { %v520_v9 = vadd.f32 %v1276_v46, %v519_v8 }
 0x203   :  { %v547_v12 = vmax.f32 %v520_v9, 0.0 }
 0x208   :  { %v521_v10 = vpop.f32.mrf.mxu2 }
 0x209   :  { %v522_v11 = vadd.f32 %v1276_v46, %v521_v10 }
 0x20b   :  { %v548_v13 = vmax.f32 %v522_v11, 0.0 }
 0x20d   :  { %v559_v14 = vpack.c.bf16 %v548_v13, %v547_v12 }
 0x20f   :  { %658 = vmatmul.bf16.gmra.mxu3 %v559_v14 }
 0x210   :  { %v524_v15 = vpop.f32.mrf.mxu2 }
 0x211   :  { %v525_v16 = vadd.f32 %v1276_v46, %v524_v15 }
 0x213   :  { %v549_v19 = vmax.f32 %v525_v16, 0.0 }
 0x218   :  { %v526_v17 = vpop.f32.mrf.mxu2 }
 0x219   :  { %v527_v18 = vadd.f32 %v1276_v46, %v526_v17 }
 0x21b   :  { %v550_v20 = vmax.f32 %v527_v18, 0.0 }
 0x21d   :  { %v560_v21 = vpack.c.bf16 %v550_v20, %v549_v19 }
 0x21f   :  { %663 = vmatmul.bf16.gmra.mxu3 %v560_v21 }
 0x220   :  { %v529_v23 = vpop.f32.mrf.mxu2 }
 0x221   :  { %v530_v26 = vadd.f32 %v1276_v46, %v529_v23 }
 0x223   :  { %v551_v30 = vmax.f32 %v530_v26, 0.0 }
 0x228   :  { %v531_v27 = vpop.f32.mrf.mxu2 }
 0x229   :  { %v532_v28 = vadd.f32 %v1276_v46, %v531_v27 }
 0x22b   :  { %v552_v31 = vmax.f32 %v532_v28, 0.0 }
 0x22d   :  { %v561_v32 = vpack.c.bf16 %v552_v31, %v551_v30 }
 0x22f   :  { %668 = vmatmul.bf16.gmra.mxu3 %v561_v32 }
 0x230   :  { %v534_v34 = vpop.f32.mrf.mxu2 }
 0x231   :  { %v535_v37 = vadd.f32 %v1276_v46, %v534_v34 }
 0x233   :  { %v553_v40 = vmax.f32 %v535_v37, 0.0  ;;  %v1113_v37 = vld [vmem:[%s1366_s2 + $0x4] ss:$0 sm:$0xff] }
 0x238   :  { %v536_v38 = vpop.f32.mrf.mxu2 }
 0x239   :  { %v537_v39 = vadd.f32 %v1276_v46, %v536_v38 }
 0x23b   :  { %v554_v41 = vmax.f32 %v537_v39, 0.0 }
 0x23d   :  { %v562_v45 = vpack.c.bf16 %v554_v41, %v553_v40 }
 0x23f   :  { %673 = vmatmul.bf16.gmra.mxu3 %v562_v45 }
 0x252   :  { %v639_v47 = vpop.f32.mrf.mxu3 }
 0x253   :  { %v640_v49 = vadd.f32 %v1112_v48, %v639_v47 }
 0x255   :  { %v679_v50 = vmax.f32 %v640_v49, 0.0 }
 0x25a   :  { %v641_v42 = vpop.f32.mrf.mxu3 }
 0x25b   :  { %v642_v44 = vadd.f32 %v1112_v48, %v641_v42 }
 0x25d   :  { %v680_v51 = vmax.f32 %v642_v44, 0.0 }
 0x25f   :  { %v695_v52 = vpack.c.bf16 %v680_v51, %v679_v50 }
 0x261   :  { %778 = vmatmul.bf16.vlgmr.msrb.gmra.mxu0 %v695_v52 }
 0x262   :  { %v644_v46 = vpop.f32.mrf.mxu3 }
 0x263   :  { %v645_v53 = vadd.f32 %v1112_v48, %v644_v46 }
 0x265   :  { %v681_v56 = vmax.f32 %v645_v53, 0.0 }
 0x26a   :  { %v646_v54 = vpop.f32.mrf.mxu3 }
 0x26b   :  { %v647_v55 = vadd.f32 %v1112_v48, %v646_v54 }
 0x26d   :  { %v682_v57 = vmax.f32 %v647_v55, 0.0 }
 0x26f   :  { %v696_v58 = vpack.c.bf16 %v682_v57, %v681_v56 }
 0x271   :  { %783 = vmatmul.bf16.gmra.mxu0 %v696_v58 }
 0x272   :  { %v649_v59 = vpop.f32.mrf.mxu3 }
 0x273   :  { %v650_v60 = vadd.f32 %v1112_v48, %v649_v59 }
 0x275   :  { %v683_v63 = vmax.f32 %v650_v60, 0.0 }
 0x27a   :  { %v651_v61 = vpop.f32.mrf.mxu3 }
 0x27b   :  { %v652_v62 = vadd.f32 %v1112_v48, %v651_v61 }
 0x27d   :  { %v684_v0 = vmax.f32 %v652_v62, 0.0 }
 0x27f   :  { %v697_v1 = vpack.c.bf16 %v684_v0, %v683_v63 }
 0x281   :  { %788 = vmatmul.bf16.gmra.mxu0 %v697_v1 }
 0x282   :  { %v654_v2 = vpop.f32.mrf.mxu3 }
 0x283   :  { %v655_v3 = vadd.f32 %v1112_v48, %v654_v2 }
 0x285   :  { %v685_v6 = vmax.f32 %v655_v3, 0.0 }
 0x28a   :  { %v656_v4 = vpop.f32.mrf.mxu3 }
 0x28b   :  { %v657_v5 = vadd.f32 %v1112_v48, %v656_v4 }
 0x28d   :  { %v686_v7 = vmax.f32 %v657_v5, 0.0 }
 0x28f   :  { %v698_v8 = vpack.c.bf16 %v686_v7, %v685_v6 }
 0x291   :  { %793 = vmatmul.bf16.gmra.mxu0 %v698_v8 }
 0x292   :  { %v659_v9 = vpop.f32.mrf.mxu3 }
 0x293   :  { %v660_v10 = vadd.f32 %v1112_v48, %v659_v9 }
 0x295   :  { %v687_v13 = vmax.f32 %v660_v10, 0.0 }
 0x29a   :  { %v661_v11 = vpop.f32.mrf.mxu3 }
 0x29b   :  { %v662_v12 = vadd.f32 %v1112_v48, %v661_v11 }
 0x29d   :  { %v688_v14 = vmax.f32 %v662_v12, 0.0 }
 0x29f   :  { %v699_v15 = vpack.c.bf16 %v688_v14, %v687_v13 }
 0x2a1   :  { %798 = vmatmul.bf16.gmra.mxu0 %v699_v15 }
 0x2a2   :  { %v664_v16 = vpop.f32.mrf.mxu3 }
 0x2a3   :  { %v665_v17 = vadd.f32 %v1112_v48, %v664_v16 }
 0x2a5   :  { %v689_v20 = vmax.f32 %v665_v17, 0.0 }
 0x2aa   :  { %v666_v18 = vpop.f32.mrf.mxu3 }
 0x2ab   :  { %v667_v19 = vadd.f32 %v1112_v48, %v666_v18 }
 0x2ad   :  { %v690_v21 = vmax.f32 %v667_v19, 0.0 }
 0x2af   :  { %v700_v22 = vpack.c.bf16 %v690_v21, %v689_v20 }
 0x2b1   :  { %803 = vmatmul.bf16.gmra.mxu0 %v700_v22 }
 0x2b2   :  { %v669_v23 = vpop.f32.mrf.mxu3 }
 0x2b3   :  { %v670_v24 = vadd.f32 %v1112_v48, %v669_v23 }
 0x2b5   :  { %v691_v27 = vmax.f32 %v670_v24, 0.0 }
 0x2ba   :  { %v671_v25 = vpop.f32.mrf.mxu3 }
 0x2bb   :  { %v672_v26 = vadd.f32 %v1112_v48, %v671_v25 }
 0x2bd   :  { %v692_v28 = vmax.f32 %v672_v26, 0.0 }
 0x2bf   :  { %v701_v29 = vpack.c.bf16 %v692_v28, %v691_v27 }
 0x2c1   :  { %808 = vmatmul.bf16.gmra.mxu0 %v701_v29 }
 0x2c2   :  { %v674_v30 = vpop.f32.mrf.mxu3 }
 0x2c3   :  { %v675_v31 = vadd.f32 %v1112_v48, %v674_v30 }
 0x2c5   :  { %v693_v34 = vmax.f32 %v675_v31, 0.0 }
 0x2ca   :  { %v676_v32 = vpop.f32.mrf.mxu3 }
 0x2cb   :  { %v677_v33 = vadd.f32 %v1112_v48, %v676_v32 }
 0x2cd   :  { %v694_v35 = vmax.f32 %v677_v33, 0.0 }
 0x2cf   :  { %v702_v36 = vpack.c.bf16 %v694_v35, %v693_v34 }
 0x2d1   :  { %813 = vmatmul.bf16.gmra.mxu0 %v702_v36 }
 0x2de   :  { %v779_v38 = vpop.f32.mrf.mxu0 }
 0x2df   :  { %v780_v39 = vadd.f32 %v1113_v37, %v779_v38 }
 0x2e1   :  { %820 = vst.msk [vmem:[%s1367_s3] sm:$0xff] %vm819_vm1, %v780_v39 }
 0x2e6   :  { %v781_v40 = vpop.f32.mrf.mxu0 }
 0x2e7   :  { %v782_v41 = vadd.f32 %v1113_v37, %v781_v40 }
 0x2e9   :  { %821 = vst.msk [vmem:[%s1367_s3 + $0x8] sm:$0xff] %vm819_vm1, %v782_v41 }
 0x2ee   :  { %v784_v43 = vpop.f32.mrf.mxu0 }
 0x2ef   :  { %v785_v45 = vadd.f32 %v1113_v37, %v784_v43 }
 0x2f1   :  { %822 = vst.msk [vmem:[%s1367_s3 + $0x10] sm:$0xff] %vm819_vm1, %v785_v45 }
 0x2f6   :  { %v786_v47 = vpop.f32.mrf.mxu0 }
 0x2f7   :  { %v787_v48 = vadd.f32 %v1113_v37, %v786_v47 }
 0x2f9   :  { %823 = vst.msk [vmem:[%s1367_s3 + $0x18] sm:$0xff] %vm819_vm1, %v787_v48 }
 0x2fe   :  { %v789_v49 = vpop.f32.mrf.mxu0 }
 0x2ff   :  { %v790_v42 = vadd.f32 %v1113_v37, %v789_v49 }
 0x301   :  { %824 = vst.msk [vmem:[%s1367_s3 + $0x20] sm:$0xff] %vm819_vm1, %v790_v42 }
 0x306   :  { %v791_v44 = vpop.f32.mrf.mxu0 }
 0x307   :  { %v792_v50 = vadd.f32 %v1113_v37, %v791_v44 }
 0x309   :  { %825 = vst.msk [vmem:[%s1367_s3 + $0x28] sm:$0xff] %vm819_vm1, %v792_v50 }
 0x30e   :  { %v794_v51 = vpop.f32.mrf.mxu0 }
 0x30f   :  { %v795_v52 = vadd.f32 %v1113_v37, %v794_v51 }
 0x311   :  { %826 = vst.msk [vmem:[%s1367_s3 + $0x30] sm:$0xff] %vm819_vm1, %v795_v52 }
 0x316   :  { %v796_v46 = vpop.f32.mrf.mxu0 }
 0x317   :  { %v797_v53 = vadd.f32 %v1113_v37, %v796_v46 }
 0x319   :  { %827 = vst.msk [vmem:[%s1367_s3 + $0x38] sm:$0xff] %vm819_vm1, %v797_v53 }
 0x31e   :  { %v799_v54 = vpop.f32.mrf.mxu0 }
 0x31f   :  { %v800_v55 = vadd.f32 %v1113_v37, %v799_v54 }
 0x321   :  { %828 = vst.msk [vmem:[%s1367_s3 + $0x40] sm:$0xff] %vm819_vm1, %v800_v55 }
 0x326   :  { %v801_v56 = vpop.f32.mrf.mxu0 }
 0x327   :  { %v802_v57 = vadd.f32 %v1113_v37, %v801_v56 }
 0x329   :  { %829 = vst.msk [vmem:[%s1367_s3 + $0x48] sm:$0xff] %vm819_vm1, %v802_v57 }
 0x32e   :  { %v804_v58 = vpop.f32.mrf.mxu0 }
 0x32f   :  { %v805_v59 = vadd.f32 %v1113_v37, %v804_v58 }
 0x331   :  { %830 = vst.msk [vmem:[%s1367_s3 + $0x50] sm:$0xff] %vm819_vm1, %v805_v59 }
 0x336   :  { %v806_v60 = vpop.f32.mrf.mxu0 }
 0x337   :  { %v807_v61 = vadd.f32 %v1113_v37, %v806_v60 }
 0x339   :  { %831 = vst.msk [vmem:[%s1367_s3 + $0x58] sm:$0xff] %vm819_vm1, %v807_v61 }
 0x33e   :  { %v809_v62 = vpop.f32.mrf.mxu0 }
 0x33f   :  { %v810_v63 = vadd.f32 %v1113_v37, %v809_v62 }
 0x341   :  { %832 = vst.msk [vmem:[%s1367_s3 + $0x60] sm:$0xff] %vm819_vm1, %v810_v63 }
 0x346   :  { %v811_v0 = vpop.f32.mrf.mxu0 }
 0x347   :  { %v812_v1 = vadd.f32 %v1113_v37, %v811_v0 }
 0x349   :  { %833 = vst.msk [vmem:[%s1367_s3 + $0x68] sm:$0xff] %vm819_vm1, %v812_v1 }
 0x34e   :  { %v814_v2 = vpop.f32.mrf.mxu0 }
 0x34f   :  { %v815_v3 = vadd.f32 %v1113_v37, %v814_v2 }
 0x351   :  { %834 = vst.msk [vmem:[%s1367_s3 + $0x70] sm:$0xff] %vm819_vm1, %v815_v3 }
 0x356   :  { %v816_v4 = vpop.f32.mrf.mxu0 }
 0x357   :  { %v817_v5 = vadd.f32 %v1113_v37, %v816_v4 }
 0x359   :  { %835 = vst.msk [vmem:[%s1367_s3 + $0x78] sm:$0xff] %vm819_vm1, %v817_v5 }
 0x35a   :  { %840 = vsyncpa [#allocation4], 1 }

</bundles_post_ra>
